<compile_context>
chip_gen: v6e
topology: v6e:2x2x1
jax: 0.10.0
libtpu: 0.0.40
codegen_flags: <defaults>
</compile_context>

<pallas_src>
import math

import jax
import jax.numpy as jnp
from jax.experimental import pallas as pl
from jax.experimental.pallas import tpu as pltpu


def _pe_add_kernel(x_ref, pe_ref, o_ref):
    # x_ref:  (tS, B, D) block
    # pe_ref: (tS, D) block -- broadcast over the batch axis on the VPU.
    o_ref[...] = x_ref[...] + pe_ref[...][:, None, :]


def make_pe_table(d_model: int, max_len: int = 1500) -> jnp.ndarray:
    """Deterministic sinusoidal PE buffer, shape (max_len, 1, d_model) like the torch module."""
    assert d_model % 2 == 0, "d_model must be even (0::2 / 1::2 interleave)"
    position = jnp.arange(0, max_len, dtype=jnp.float32)[:, None]            # (max_len, 1)
    div_term = jnp.exp(
        jnp.arange(0, d_model, 2, dtype=jnp.float32) * (-math.log(10000.0) / d_model)
    )                                                                         # (d_model//2,)
    pe = jnp.zeros((max_len, d_model), dtype=jnp.float32)
    pe = pe.at[:, 0::2].set(jnp.sin(position * div_term))
    pe = pe.at[:, 1::2].set(jnp.cos(position * div_term))
    # unsqueeze(0).transpose(0, 1) -> (max_len, 1, d_model)
    return pe[:, None, :]


def _pick_tile_s(S: int, B: int, D: int, itemsize: int,
                 budget_bytes: int = 32 * 1024 * 1024) -> int:
    """Largest S-tile whose double-buffered VMEM footprint stays under budget.

    Live bytes ~= 2*(x tile + out tile) + 2*pe tile  (all double-buffered).
    Budget of 32 MiB keeps us safe even on v7x's 64 MiB physical VMEM; on
    v5e/v6e (128 MiB) it is comfortably conservative.
    """
    bytes_per_row = 2 * (2 * B * D + D) * itemsize
    tS = max(8, budget_bytes // max(bytes_per_row, 1))
    # 512-1024-row tiles already reach ~85% of HBM roofline; bigger only
    # lengthens the pipeline warm-up.
    tS = min(tS, 1024)
    if tS >= S:
        return S
    return max(8, (tS // 8) * 8)   # keep pe block (tS, D) (8,128)-aligned


def positional_encoding(x: jnp.ndarray, pe: jnp.ndarray, *, tile_s: int | None = None) -> jnp.ndarray:
    """x: (S, B, D); pe: (max_len, 1, D). Returns x + pe[:S] (eval-mode dropout = identity)."""
    S, B, D = x.shape
    max_len = pe.shape[0]
    assert S <= max_len, f"sequence length {S} exceeds positional table max_len {max_len}"
    assert pe.shape[2] == D, "pe feature dim must match x"

    # Squeeze the size-1 batch dim and match x's dtype (avoid implicit f32->bf16
    # downcast inside the kernel store path).
    pe2d = pe[:S, 0, :].astype(x.dtype)                                       # (S, D)

    itemsize = jnp.dtype(x.dtype).itemsize
    tS = tile_s if tile_s is not None else _pick_tile_s(S, B, D, itemsize)
    tS = min(tS, S)
    grid = (pl.cdiv(S, tS),)

    cost = pl.CostEstimate(
        flops=S * B * D,
        transcendentals=0,
        bytes_accessed=2 * S * B * D * itemsize + S * D * itemsize,
    )

    return pl.pallas_call(
        _pe_add_kernel,
        out_shape=jax.ShapeDtypeStruct((S, B, D), x.dtype),
        grid_spec=pltpu.PrefetchScalarGridSpec(
            num_scalar_prefetch=0,
            grid=grid,
            in_specs=[
                pl.BlockSpec((tS, B, D), lambda s: (s, 0, 0)),
                pl.BlockSpec((tS, D), lambda s: (s, 0)),
            ],
            out_specs=pl.BlockSpec((tS, B, D), lambda s: (s, 0, 0)),
        ),
        compiler_params=pltpu.CompilerParams(
            # Pure elementwise add, no reduction axis -> shard across both
            # TensorCores on v7x; no-op on single-TC v5e/v6e.
            dimension_semantics=("parallel",),
            vmem_limit_bytes=48 * 1024 * 1024,
        ),
        cost_estimate=cost,
    )(x, pe2d)


if __name__ == "__main__":
    key = jax.random.PRNGKey(0)

    # Primary check: lane-dense (D = 128), multiple grid steps (S=24, tile_s=8).
    S, B, D = 24, 4, 128
    x = jax.random.normal(key, (S, B, D), dtype=jnp.float32)
    pe = make_pe_table(d_model=D, max_len=1500)
    out = jax.block_until_ready(positional_encoding(x, pe, tile_s=8))
    ref = x + pe[:S]
    assert out.shape == (S, B, D)
    assert jnp.allclose(out, ref, atol=1e-6), "mismatch vs reference (tiled case)"

    # Secondary check: small, non-lane-dense shape from the original module
    # example, auto tile selection (single grid step).
    S2, B2, D2 = 8, 2, 32
    x2 = jax.random.normal(jax.random.PRNGKey(1), (S2, B2, D2), dtype=jnp.float32)
    pe2 = make_pe_table(d_model=D2, max_len=1500)
    out2 = jax.block_until_ready(positional_encoding(x2, pe2))
    ref2 = x2 + pe2[:S2]
    assert out2.shape == (S2, B2, D2)
    assert jnp.allclose(out2, ref2, atol=1e-6), "mismatch vs reference (small case)"

    print("KERNEL_OK")
</pallas_src>

<mosaic_0001>
module attributes {stable_mosaic.version = 11 : i64} {
  func.func @_pe_add_kernel(%arg0: i32, %arg1: memref<8x4x128xf32, #tpu.memory_space<vmem>>, %arg2: memref<8x128xf32, #tpu.memory_space<vmem>>, %arg3: memref<8x4x128xf32, #tpu.memory_space<vmem>>) attributes {dimension_semantics = [#tpu.dimension_semantics<parallel>], iteration_bounds = array<i64: 3>, scalar_prefetch = 0 : i64, scratch_operands = 0 : i64, tpu.core_type = #tpu.core_type<tc>, window_params = [{transform_indices = @transform_0, window_bounds = array<i64: 8, 4, 128>}, {transform_indices = @transform_1, window_bounds = array<i64: 8, 128>}, {transform_indices = @transform_2, window_bounds = array<i64: 8, 4, 128>}]} {
    %c0 = arith.constant 0 : index
    %c0_0 = arith.constant 0 : index
    %c0_1 = arith.constant 0 : index
    %0 = vector.load %arg1[%c0, %c0_0, %c0_1] : memref<8x4x128xf32, #tpu.memory_space<vmem>>, vector<8x4x128xf32>
    %c0_2 = arith.constant 0 : index
    %c0_3 = arith.constant 0 : index
    %1 = vector.load %arg2[%c0_2, %c0_3] : memref<8x128xf32, #tpu.memory_space<vmem>>, vector<8x128xf32>
    %2 = vector.shape_cast %1 : vector<8x128xf32> to vector<8x1x128xf32>
    %3 = vector.broadcast %2 : vector<8x1x128xf32> to vector<8x4x128xf32>
    %4 = arith.addf %0, %3 : vector<8x4x128xf32>
    %c0_4 = arith.constant 0 : index
    %c0_5 = arith.constant 0 : index
    %c0_6 = arith.constant 0 : index
    %5 = vector.load %arg3[%c0_4, %c0_5, %c0_6] : memref<8x4x128xf32, #tpu.memory_space<vmem>>, vector<8x4x128xf32>
    tpu.vector_store %arg3[%c0_4, %c0_5, %c0_6], %4 {strides = array<i32>} : memref<8x4x128xf32, #tpu.memory_space<vmem>>, vector<8x4x128xf32>,
    return
  }
  func.func @transform_0(%arg0: i32) -> (i32, i32, i32) {
    %c0_i32 = arith.constant 0 : i32
    %c0_i32_0 = arith.constant 0 : i32
    %c0_i32_1 = arith.constant 0 : i32
    return %arg0, %c0_i32, %c0_i32_0 : i32, i32, i32
  }
  func.func @transform_1(%arg0: i32) -> (i32, i32) {
    %c0_i32 = arith.constant 0 : i32
    %c0_i32_0 = arith.constant 0 : i32
    return %arg0, %c0_i32 : i32, i32
  }
  func.func @transform_2(%arg0: i32) -> (i32, i32, i32) {
    %c0_i32 = arith.constant 0 : i32
    %c0_i32_0 = arith.constant 0 : i32
    %c0_i32_1 = arith.constant 0 : i32
    return %arg0, %c0_i32, %c0_i32_0 : i32, i32, i32
  }
}

</mosaic_0001>

<bundles_post_ra>
// kernel: tpu_custom_call.1
= control target key start
LH: loop header
LB: loop body
LE: loop exit
PB: predicated region body
PF: predicated region fallthrough
CT: control target
= control target key end

     0   :  { %7 = vsyncpa [#allocation3], 0  ;;  %s858_s0 = inlined_call_operand.hbm [shape: f32[24,4,128], index: 0, kind: input, shape index: {}]   ;;  %s859_s1 = inlined_call_operand.hbm [shape: f32[24,128], index: 1, kind: input, shape index: {}]   ;;  %s860_s2 = inlined_call_operand.hbm [shape: f32[24,4,128], index: 2, kind: output, shape index: {}]  }
   0x1   :  { %9 = vsyncpa [#allocation3 + $0x1], 0 }
   0x2   :  { %10 = vsyncpa [#allocation6], 0 }
   0x3   :  { %12 = vsyncpa [#allocation6 + $0x1], 0 }
   0x4   :  { %13 = vsyncpa [#allocation4], 0 }
   0x5   :  { %15 = vsyncpa [#allocation4 + $0x1], 0  ;;  %s651_s9 = smov 0   ;;  %s653_s10 = smov 0  }
   0x6   :  { %s655_s11 = smov 0   ;;  %s657_s12 = smov 0  }
   0x7 LB: > { %s672_s13 = sadd.s32 4294967295, %s626_s12   ;;  %s426_s14 = sadd.s32 4294967294, %s626_s12   ;;  %s626_s12 = sphi %s657_s12, %s876_s12   ;;  %s622_s11 = sphi %s655_s11, %s875_s11   ;;  %s618_s10 = sphi %s653_s10, %s874_s10   ;;  %s614_s9 = sphi %s651_s9, %s873_s9  }
   0x8   : > { %s676_s15 = sadd.s32 1, %s626_s12   ;;  %s28_s16 = sadd.s32 1, %s622_s11 }
   0x9   : > { %s25_s17 = ssub.s32 %s626_s12, %s676_s15  ;;  %p35_p0 = scmp.ne.s32.totalorder %s622_s11, %s618_s10 }
   0xa   : > { %p26_p1 = scmp.eq.s32.totalorder %s25_s17, 0  ;;  %p36_p2 = scmp.eq.s32.totalorder %s626_s12, 0 }
   0xb   : > { %p41_p3 = scmp.ne.s32.totalorder %s618_s10, %s614_s9  ;;  %p42_p4 = scmp.eq.s32.totalorder %s672_s13, 0 }
   0xc   : > { %s688_s18 = scalar_select %p26_p1, %s622_s11, %s28_s16  }
   0xd   : > { %p690_p5 = por %p36_p2, %p35_p0  ;;  %p694_p6 = por %p42_p4, %p41_p3 }
   0xe   : > { %p91_p7 = scmp.eq.s32.totalorder %s672_s13, 2  ;;  %p97_p8 = scmp.eq.s32.totalorder %s426_s14, 2 }
   0xf   : > { %s864_s20 = scalar_select %p694_p6, 1, 0 }
  0x10   : > { %p462_p9 = scmp.lt.s32.totalorder %s626_s12, 3  ;;  %p700_p10 = por %p91_p7, %p35_p0 }
  0x11   : > { %p704_p11 = por %p97_p8, %p41_p3  ;;  %s709_s23 = sand.u32 1, %s622_s11  }
  0x12   : > { %s865_s21 = scalar_select %p700_p10, 1, 0 }
  0x13   : > { %s866_s22 = scalar_select %p704_p11, 1, 0 }
  0x14   : > { %s443_s24 = sshll.u32 %s626_s12, 9  ;;  %s429_s25 = sshll.u32 %s709_s23, 5 }
  0x15   : > { %s716_s28 = scalar_lea.hbm %s858_s0, %s443_s24  ;;  %s121_s29 = scalar_lea.vmem [#allocation2], %s429_s25 }
  0x16   : > { %s128_s30 = sshll.u32 %s121_s29, 4  ;;  %p720_p12 = pnand %p462_p9, %p690_p5  ;;  %s724_s30 = int_to_ptr.vmem [resolvable:$true] %s128_s30 }
  0x17   : > { %s118_s4 = scalar_lea.sflag [#allocation3], %s709_s23  ;;  %s502_s5 = scalar_lea.hbm %s716_s28, 512 }
  0x18   : > { %p503_p13 = scmp.ne.s32.totalorder %s716_s28, %s502_s5  ;;  %p504_p0 = pneg %p720_p12 }
  0x19   : > { %s507_s8 = scalar_lea.hbm %s858_s0, 1536  ;;  %p508_p3 = scmp.lt.s32.totalorder %s716_s28, %s858_s0 }
  0x1a   : > { %p505_p1 = pnand %p504_p0, %p503_p13  ;;  %p509_p4 = scmp.lt.s32.totalorder %s507_s8, %s502_s5 }
  0x1c   : > { %p506_p2 = pneg %p505_p1  ;;  %p510_p5 = por %p509_p4, %p508_p3 }
  0x1e   : > { %p511_p7 = pnand %p510_p5, %p506_p2 }
  0x20   : > { %514 = shalt.err (!%p511_p7)
}
  0x21   : > { %s515_s17 = scalar_lea.vmem %s724_s30, 512  ;;  %s628_s19 = smov [#allocation2]  }
  0x22   : > { %p516_p8 = scmp.ne.s32.totalorder %s724_s30, %s515_s17  ;;  %s520_s24 = sshll.u32 %s628_s19, 4  ;;  %s521_s24 = int_to_ptr.vmem [resolvable:$false] %s520_s24 }
  0x23   : > { %s522_s25 = scalar_lea.vmem %s521_s24, 1024  ;;  %p523_p1 = scmp.lt.s32.totalorder %s724_s30, %s521_s24 }
  0x24   : > { %p518_p9 = pnand %p516_p8, %p504_p0  ;;  %p524_p11 = scmp.lt.s32.totalorder %s522_s25, %s515_s17 }
  0x26   : > { %p519_p13 = pneg %p518_p9  ;;  %p525_p10 = por %p524_p11, %p523_p1 }
  0x28   : > { %p526_p3 = pnand %p525_p10, %p519_p13 }
  0x2a   : > { %529 = shalt.err (!%p526_p3)
}
  0x2b   : > { %s629_s26 = smov 64   ;;  %s630_s27 = smov 4  }
  0x2c   : > { %454 = dma.hbm_to_vmem [thread:$0]  (!%p720_p12), %s716_s28, 512, %s724_s30, %s118_s4, %s629_s26, %s629_s26, %s630_s27  }
  0x2d   : > { %p434_p2 = scmp.ge.s32.totalorder %s626_s12, 1  ;;  %p154_p4 = scmp.lt.s32.totalorder %s626_s12, 4 }
  0x2e   : > { %s432_s29 = sshll.u32 %s709_s23, 3  ;;  %s433_s6 = sshll.u32 %s626_s12, 7 }
  0x2f   : > { %p756_p10 = pnand %p434_p2, %p154_p4  ;;  %s142_s7 = scalar_lea.vmem [#allocation5], %s432_s29 }
  0x30   : > { %s149_s8 = sshll.u32 %s142_s7, 4  ;;  %s147_s17 = scalar_lea.hbm %s859_s1, %s433_s6  ;;  %s150_s8 = int_to_ptr.vmem [resolvable:$true] %s149_s8 }
  0x31   : > { %s868_s5 = scalar_select %p756_p10, 1, 0 }
  0x32   : > { %s139_s19 = scalar_lea.sflag [#allocation6], %s709_s23  ;;  %s530_s24 = scalar_lea.hbm %s147_s17, 128 }
  0x33   : > { %p531_p11 = scmp.ne.s32.totalorder %s147_s17, %s530_s24  ;;  %s535_s4 = scalar_lea.hbm %s859_s1, 384 }
  0x34   : > { %p536_p8 = scmp.lt.s32.totalorder %s147_s17, %s859_s1  ;;  %p537_p9 = scmp.lt.s32.totalorder %s535_s4, %s530_s24 }
  0x35   : > { %p533_p5 = pnand %p531_p11, %p504_p0 }
  0x36   : > { %p538_p13 = por %p537_p9, %p536_p8 }
  0x37   : > { %p534_p7 = pneg %p533_p5 }
  0x39   : > { %p539_p1 = pnand %p538_p13, %p534_p7 }
  0x3b   : > { %542 = shalt.err (!%p539_p1)
}
  0x3c   : > { %s543_s27 = scalar_lea.vmem %s150_s8, 128  ;;  %s631_s23 = smov [#allocation5]  }
  0x3d   : > { %p544_p3 = scmp.ne.s32.totalorder %s150_s8, %s543_s27  ;;  %s548_s29 = sshll.u32 %s631_s23, 4  ;;  %s549_s29 = int_to_ptr.vmem [resolvable:$false] %s548_s29 }
  0x3e   : > { %s550_s6 = scalar_lea.vmem %s549_s29, 256  ;;  %p551_p11 = scmp.lt.s32.totalorder %s150_s8, %s549_s29 }
  0x3f   : > { %p546_p2 = pnand %p544_p3, %p504_p0  ;;  %p552_p5 = scmp.lt.s32.totalorder %s550_s6, %s543_s27 }
  0x41   : > { %p547_p4 = pneg %p546_p2  ;;  %p553_p6 = por %p552_p5, %p551_p11 }
  0x43   : > { %p554_p10 = pnand %p553_p6, %p547_p4 }
  0x45   : > { %557 = shalt.err (!%p554_p10)
}
  0x46   : > { %457 = dma.hbm_to_vmem [thread:$0]  (!%p720_p12), %s147_s17, 128, %s150_s8, %s139_s19  }
  0x47   : > { %p869_p7 = scmp.ne.s32.totalorder %s868_s5, 0 }
  0x48   : > { %s782_s7 = sand.u32 (!%p869_p7), 1, %s618_s10   ;;  %p870_p6 = scmp.ne.s32.totalorder (!%p869_p7), %s864_s20, 0 }
  0x49   : > { %158 = sbr.rel (%p869_p7) target bundleno = 116 (0x74), region = 28  ;;  %s435_s14 = sshll.u32 (!%p869_p7), %s782_s7, 5 }
  0x4a   : > { %s161_s16 = scalar_lea.sflag (!%p869_p7), [#allocation3], %s782_s7  ;;  %s788_s24 = scalar_lea.vmem (!%p869_p7), [#allocation2], %s435_s14 }
  0x4e   : > { %601 = dma.done.wait (%p870_p6), %s161_s16, 512  }
  0x4f   : > { %603 = vsyncadd (%p870_p6), %s161_s16, 4294966784  ;;  %s436_s3 = sshll.u32 %s782_s7, 3  ;;  %s170_s5 = scalar_lea.sflag [#allocation6], %s782_s7 }
  0x50   : > { %s173_s8 = scalar_lea.vmem [#allocation5], %s436_s3 }
  0x51   : > { %605 = dma.done.wait (%p870_p6), %s170_s5, 128  }
  0x52   : > { %607 = vsyncadd (%p870_p6), %s170_s5, 4294967168  ;;  %v215_v0 = vlaneseq  ;;  %v632_v1 = vmov 1966171168   ;;  %v209_v6 = vld [vmem:[%s173_s8] sm:$0xff]  ;;  %v205_v25 = vld [vmem:[%s788_s24 + $0x10] sm:$0xf] }
  0x53   : > { %v213_v2 = vunpack.c.l.s4 %v632_v1  ;;  %v211_v9 = vcombine.high %v209_v6, %v209_v6  ;;  %v201_v13 = vld [vmem:[%s788_s24] sm:$0xf]  ;;  %v202_v18 = vld [vmem:[%s788_s24 + $0x4] sm:$0xf]  ;;  %v203_v19 = vld [vmem:[%s788_s24 + $0x8] sm:$0xf] }
  0x54   : > { %v216_v3 = vshrl.u32 %v215_v0, 7  ;;  %v204_v26 = vld [vmem:[%s788_s24 + $0xc] sm:$0xf]  ;;  %s198_s20 = scalar_lea.vmem [#allocation7], %s435_s14  ;;  %v206_v33 = vld [vmem:[%s788_s24 + $0x14] sm:$0xf] }
  0x55   : > { %v214_v4 = vunpack.c.0.s8 %v213_v2  ;;  %v207_v34 = vld [vmem:[%s788_s24 + $0x18] sm:$0xf]  ;;  %s330_s17 = sshll.u32 %s198_s20, 4  ;;  %s444_s19 = sshll.u32 %s672_s13, 9  ;;  %v208_v40 = vld [vmem:[%s788_s24 + $0x1c] sm:$0xf]  ;;  %s811_s17 = int_to_ptr.vmem [resolvable:$true] %s330_s17 }
  0x56   : > { %v262_v8 = vsub.s32 0, %v216_v3  ;;  %s816_s13 = scalar_lea.hbm %s860_s2, %s444_s19  ;;  %s317_s4 = scalar_lea.sflag [#allocation4], %s782_s7 }
  0x57   : > { %v217_v5 = vsub.s32 %v214_v4, %v216_v3  ;;  %s558_s25 = scalar_lea.vmem %s811_s17, 512  ;;  %p871_p0 = scmp.ne.s32.totalorder %s865_s21, 0 }
  0x58   : > { %p559_p12 = scmp.ne.s32.totalorder %s811_s17, %s558_s25  ;;  %s633_s26 = smov [#allocation7]  }
  0x59   : > { %v218_v7 = vrot.slane %v209_v6, %v217_v5  ;;  %v225_v12 = vrot.slane %v211_v9, %v217_v5  ;;  %s562_s27 = sshll.u32 %s633_s26, 4  ;;  %s563_s27 = int_to_ptr.vmem [resolvable:$false] %s562_s27 }
  0x5a   : > { %p560_p10 = pnand %p559_p12, %p871_p0  ;;  %s564_s23 = scalar_lea.vmem %s563_s27, 1024 }
  0x5b   : > { %v234_v10 = vrot.slane %v218_v7, %v217_v5  ;;  %v226_v11 = vcombine.high %v218_v7, %v218_v7  ;;  %v241_v17 = vrot.slane %v225_v12, %v217_v5  ;;  %v227_v20 = vcombine.high %v225_v12, %v225_v12  ;;  %p565_p9 = scmp.lt.s32.totalorder %s811_s17, %s563_s27  ;;  %p566_p13 = scmp.lt.s32.totalorder %s564_s23, %s558_s25 }
  0x5c   : > { %p561_p8 = pneg %p560_p10 }
  0x5d   : > { %v263_v14 = vrot.slane %v234_v10, %v262_v8  ;;  %v248_v15 = vrot.slane %v226_v11, %v217_v5  ;;  %v256_v16 = vcombine.high %v234_v10, %v234_v10  ;;  %v279_v27 = vrot.slane %v241_v17, %v262_v8  ;;  %p567_p1 = por %p566_p13, %p565_p9 }
  0x5e   : > { %v255_v28 = vrot.slane %v227_v20, %v217_v5  ;;  %v257_v29 = vcombine.high %v241_v17, %v241_v17 }
  0x5f   : > { %v300_v21 = vadd.f32 %v263_v14, %v201_v13  ;;  %v267_v22 = vrot.slane %v248_v15, %v262_v8  ;;  %v271_v23 = vrot.slane %v256_v16, %v262_v8  ;;  %v258_v24 = vcombine.high %v248_v15, %v248_v15  ;;  %p568_p3 = pnand %p567_p1, %p561_p8 }
  0x60   : > { %v304_v35 = vadd.f32 %v279_v27, %v205_v25  ;;  %v283_v36 = vrot.slane %v255_v28, %v262_v8  ;;  %v287_v37 = vrot.slane %v257_v29, %v262_v8  ;;  %v259_v38 = vcombine.high %v255_v28, %v255_v28 }
  0x61   : > { %308 = vst [vmem:[%s198_s20] sm:$0xf] %v300_v21  ;;  %v301_v30 = vadd.f32 %v267_v22, %v202_v18  ;;  %v302_v31 = vadd.f32 %v271_v23, %v203_v19  ;;  %v275_v32 = vrot.slane %v258_v24, %v262_v8 }
  0x62   : > { %312 = vst [vmem:[%s198_s20 + $0x10] sm:$0xf] %v304_v35  ;;  %v305_v41 = vadd.f32 %v283_v36, %v206_v33  ;;  %v306_v42 = vadd.f32 %v287_v37, %v207_v34  ;;  %v291_v43 = vrot.slane %v259_v38, %v262_v8 }
  0x63   : > { %309 = vst [vmem:[%s198_s20 + $0x4] sm:$0xf] %v301_v30  ;;  %310 = vst [vmem:[%s198_s20 + $0x8] sm:$0xf] %v302_v31  ;;  %v303_v39 = vadd.f32 %v275_v32, %v204_v26 }
  0x64   : > { %313 = vst [vmem:[%s198_s20 + $0x14] sm:$0xf] %v305_v41  ;;  %314 = vst [vmem:[%s198_s20 + $0x18] sm:$0xf] %v306_v42  ;;  %v307_v44 = vadd.f32 %v291_v43, %v208_v40 }
  0x65   : > { %311 = vst [vmem:[%s198_s20 + $0xc] sm:$0xf] %v303_v39 }
  0x66   : > { %315 = vst [vmem:[%s198_s20 + $0x1c] sm:$0xf] %v307_v44 }
  0x67   : > { %571 = shalt.err (!%p568_p3)
}
  0x68   : > { %s572_s29 = scalar_lea.hbm %s816_s13, 512  ;;  %s576_s16 = scalar_lea.hbm %s860_s2, 1536 }
  0x69   : > { %p573_p2 = scmp.ne.s32.totalorder %s816_s13, %s572_s29  ;;  %p577_p5 = scmp.lt.s32.totalorder %s816_s13, %s860_s2 }
  0x6a   : > { %p578_p7 = scmp.lt.s32.totalorder %s576_s16, %s572_s29 }
  0x6b   : > { %p574_p4 = pnand %p573_p2, %p871_p0 }
  0x6c   : > { %p579_p6 = por %p578_p7, %p577_p5 }
  0x6d   : > { %p575_p11 = pneg %p574_p4 }
  0x6f   : > { %p580_p12 = pnand %p579_p6, %p575_p11 }
  0x71   : > { %583 = shalt.err (!%p580_p12)
}
  0x72   : > { %s634_s5 = smov 64   ;;  %s635_s8 = smov 4  }
  0x73   : > { %449 = dma.vmem_to_hbm [thread:$0]  (%p871_p0), %s811_s17, 512, %s816_s13, %s317_s4, %s634_s5, %s634_s5, %s635_s8  }
  0x74 PF: > { %p463_p10 = scmp.ge.s32.totalorder %s626_s12, 2  ;;  %s345_s20 = sand.u32 1, %s614_s9  }
  0x75   : > { %p872_p8 = scmp.ne.s32.totalorder %s866_s22, 0  ;;  %s346_s19 = scalar_lea.sflag [#allocation4], %s345_s20 }
  0x77   : > { %p459_p9 = pnand %p463_p10, %p872_p8 }
  0x79   : > { %p460_p13 = pneg %p459_p9 }
  0x7b   : > { %609 = dma.done.wait (%p460_p13), %s346_s19, 512  }
  0x7c   : > { %611 = vsyncadd (%p460_p13), %s346_s19, 4294966784  ;;  %p18_p1 = scmp.ge.s32.totalorder %s676_s15, 5   ;;  %s873_s9 = smov %s618_s10 }
  0x7d   : > { %s874_s10 = smov %s622_s11  ;;  %s875_s11 = smov %s688_s18 }
  0x7e   : > { %s876_s12 = smov %s676_s15  ;;  %20 = sbr.rel (!%p18_p1) target bundleno = 7 (0x7), region = 86 }
  0x83   :  { %351 = vsyncpa [#allocation3], 1 }
  0x84   :  { %353 = vsyncpa [#allocation3 + $0x1], 1 }
  0x85   :  { %354 = vsyncpa [#allocation6], 1 }
  0x86   :  { %356 = vsyncpa [#allocation6 + $0x1], 1 }
  0x87   :  { %357 = vsyncpa [#allocation4], 1 }
  0x88   :  { %359 = vsyncpa [#allocation4 + $0x1], 1 }

</bundles_post_ra>
